<compile_context>
chip_gen: v7x
topology: tpu7x:2x2x1
jax: 0.10.0
libtpu: 0.0.40
codegen_flags: <defaults>
</compile_context>

<pallas_src>
import functools

import jax
import jax.numpy as jnp
from jax import lax
from jax.experimental import pallas as pl
from jax.experimental.pallas import tpu as pltpu

_LANE = 128
_TARGET_BLOCK_BYTES = 4 * 1024 * 1024   # per-operand, per-grid-step DMA size
_SUB_ROWS = 512                          # rows per in-kernel compute chunk (bounds live vregs)


def _neg_mse_sum_kernel(o_ref, t_ref, out_ref, *,
                        steps_per_core, tm, valid_rows, emit_edge):
    """Accumulates sum((o - t)^2) for this core's row range into out_ref (8, 128) f32."""
    p = pl.program_id(0)            # (potentially) core-parallel axis
    s = pl.program_id(1)            # sequential reduction axis
    blk = p * steps_per_core + s    # logical (unclamped) block index
    row0 = blk * tm                 # first global row covered by this step

    @pl.when(s == 0)
    def _init():
        out_ref[...] = jnp.zeros_like(out_ref)

    def _chunk_sum(start, size, mask_rows):
        o = o_ref[pl.ds(start, size), :].astype(jnp.float32)
        t = t_ref[pl.ds(start, size), :].astype(jnp.float32)
        d = o - t
        sq = d * d
        if mask_rows:
            # Rows past the end of the data hold stale VMEM -> zero them out.
            rid = row0 + start + lax.broadcasted_iota(jnp.int32, (size, 1), 0)
            sq = jnp.where(rid < valid_rows, sq, 0.0)
        # Fold (size, 128) -> (8, 128): pure VPU adds across leading tiles, no XLU.
        return jnp.sum(sq.reshape(size // 8, 8, _LANE), axis=0)

    def _accumulate(mask_rows):
        start = 0
        while start < tm:                       # static Python loop (tm is compile-time)
            size = min(_SUB_ROWS, tm - start)
            out_ref[...] += _chunk_sum(start, size, mask_rows)
            start += size

    # Common case: the whole (tm, 128) block lies inside the valid rows -> no masking.
    @pl.when(row0 + tm <= valid_rows)
    def _full_block():
        _accumulate(mask_rows=False)

    if emit_edge:
        # Single block straddling the end of the valid rows -> masked accumulate.
        @pl.when(jnp.logical_and(row0 < valid_rows, row0 + tm > valid_rows))
        def _edge_block():
            _accumulate(mask_rows=True)
    # Overhang step (row0 >= valid_rows, odd block count split over 2 cores): no branch
    # fires, so it contributes nothing (its DMA index is clamped in the index_map).


def maximize_mse_loss(output, target, *, block_bytes=_TARGET_BLOCK_BYTES):
    """Returns -MSE(output, target) as a scalar f32 (matches nn.MSELoss default 'mean')."""
    assert output.shape == target.shape, "output/target must have identical shapes"
    n_elems = int(output.size)

    flat_o = output.reshape(-1)
    flat_t = target.reshape(-1)

    itemsize_o = jnp.dtype(output.dtype).itemsize
    itemsize_t = jnp.dtype(target.dtype).itemsize
    # Dtype-aware sublane packing: 8 rows for 4-byte, 16 for 2-byte, 32 for 1-byte dtypes.
    pack = 32 // min(itemsize_o, itemsize_t)
    granule = pack * _LANE

    n_main = n_elems - (n_elems % granule)
    if n_main == 0:
        # Smaller than one packed tile: plain JAX is simpler and faster than a kernel launch.
        d = flat_o.astype(jnp.float32) - flat_t.astype(jnp.float32)
        return (-jnp.sum(d * d) / jnp.float32(n_elems)).astype(jnp.float32)

    rows = n_main // _LANE                       # multiple of `pack`
    o2d = flat_o[:n_main].reshape(rows, _LANE)   # zero-copy slice + reshape (no padding copy)
    t2d = flat_t[:n_main].reshape(rows, _LANE)

    max_tm = block_bytes // (_LANE * max(itemsize_o, itemsize_t))   # 8192 rows for f32
    tm = min(max_tm, rows)                                          # multiple of `pack`
    total_blocks = -(-rows // tm)
    has_edge = (rows % tm) != 0

    # Split the block loop into two partial sums so megacore parts (v7x) can run the halves
    # on separate TensorCores; on single-TC chips it is just a harmless sequential split.
    n_par = 2 if total_blocks >= 2 else 1
    steps = -(-total_blocks // n_par)

    kernel = functools.partial(
        _neg_mse_sum_kernel,
        steps_per_core=steps, tm=tm, valid_rows=rows, emit_edge=has_edge)

    def in_map(p, s):
        # Clamp so a possible overhang step (p*steps + s >= total_blocks when total_blocks is
        # odd) issues an in-bounds (repeated -> DMA-skipped) fetch; the kernel ignores it.
        return (jnp.minimum(p * steps + s, total_blocks - 1), 0)

    cost = pl.CostEstimate(
        flops=3 * n_main,
        transcendentals=0,
        bytes_accessed=n_main * (itemsize_o + itemsize_t) + n_par * 8 * _LANE * 4)

    partials = pl.pallas_call(
        kernel,
        out_shape=jax.ShapeDtypeStruct((n_par * 8, _LANE), jnp.float32),
        grid_spec=pltpu.PrefetchScalarGridSpec(
            num_scalar_prefetch=0,
            grid=(n_par, steps),
            in_specs=[
                pl.BlockSpec((tm, _LANE), in_map),
                pl.BlockSpec((tm, _LANE), in_map),
            ],
            out_specs=pl.BlockSpec((8, _LANE), lambda p, s: (p, 0)),
        ),
        compiler_params=pltpu.CompilerParams(
            dimension_semantics=("parallel", "arbitrary"),
            # 2 operands x 2 pipeline buffers x 4 MiB = 16 MiB worst case (+ small outputs);
            # explicit limit keeps this legal on v5e's 16 MiB scoped default as well.
            vmem_limit_bytes=32 * 1024 * 1024,
        ),
        cost_estimate=cost,
    )(o2d, t2d)

    main_sum = jnp.sum(partials)

    tail = n_elems - n_main
    if tail:
        dt = flat_o[n_main:].astype(jnp.float32) - flat_t[n_main:].astype(jnp.float32)
        main_sum = main_sum + jnp.sum(dt * dt)

    return (-main_sum / jnp.float32(n_elems)).astype(jnp.float32)


if __name__ == "__main__":
    key = jax.random.PRNGKey(0)
    k1, k2, k3, k4 = jax.random.split(key, 4)

    # Primary example: NCHW-shaped tensors (2, 4, 16, 16), f32 -> single full block.
    output = jax.random.normal(k1, (2, 4, 16, 16), dtype=jnp.float32)
    target = jax.random.normal(k2, (2, 4, 16, 16), dtype=jnp.float32)
    loss = jax.block_until_ready(maximize_mse_loss(output, target))
    ref = -jnp.mean((output - target) ** 2)
    assert jnp.allclose(loss, ref, rtol=1e-5, atol=1e-6), (loss, ref)

    # Secondary check: odd element count + tiny forced block size to exercise the
    # multi-block / edge-mask / overhang / 2-way-partial paths with small arrays.
    out2 = jax.random.normal(k3, (1, 1, 41, 129), dtype=jnp.float32)
    tgt2 = jax.random.normal(k4, (1, 1, 41, 129), dtype=jnp.float32)
    loss2 = jax.block_until_ready(maximize_mse_loss(out2, tgt2, block_bytes=8192))
    ref2 = -jnp.mean((out2 - tgt2) ** 2)
    assert jnp.allclose(loss2, ref2, rtol=1e-5, atol=1e-6), (loss2, ref2)

    print("KERNEL_OK")
</pallas_src>

<mosaic_0001>
module attributes {stable_mosaic.version = 11 : i64} {
  func.func @_neg_mse_sum_kernel(%arg0: i32, %arg1: i32, %arg2: memref<16x128xf32, #tpu.memory_space<vmem>>, %arg3: memref<16x128xf32, #tpu.memory_space<vmem>>, %arg4: memref<8x128xf32, #tpu.memory_space<vmem>>) attributes {dimension_semantics = [#tpu.dimension_semantics<parallel>, #tpu.dimension_semantics<arbitrary>], iteration_bounds = array<i64: 1, 1>, scalar_prefetch = 0 : i64, scratch_operands = 0 : i64, tpu.core_type = #tpu.core_type<tc>, window_params = [{transform_indices = @transform_0, window_bounds = array<i64: 16, 128>}, {transform_indices = @transform_1, window_bounds = array<i64: 16, 128>}, {transform_indices = @transform_2, window_bounds = array<i64: 8, 128>}]} {
    %c1_i32 = arith.constant 1 : i32
    %0 = arith.muli %arg0, %c1_i32 : i32
    %1 = arith.addi %0, %arg1 : i32
    %c16_i32 = arith.constant 16 : i32
    %2 = arith.muli %1, %c16_i32 : i32
    %c0_i32 = arith.constant 0 : i32
    %3 = arith.cmpi eq, %arg1, %c0_i32 : i32
    %4 = arith.extui %3 : i1 to i32
    %c0_i32_0 = arith.constant 0 : i32
    %5 = arith.cmpi ne, %4, %c0_i32_0 : i32
    scf.if %5 {
      %cst = arith.constant 0.000000e+00 : f32
      %10 = vector.broadcast %cst : f32 to vector<8x128xf32>
      %c0 = arith.constant 0 : index
      %c0_4 = arith.constant 0 : index
      %11 = vector.load %arg4[%c0, %c0_4] : memref<8x128xf32, #tpu.memory_space<vmem>>, vector<8x128xf32>
      tpu.vector_store %arg4[%c0, %c0_4], %10 {strides = array<i32>} : memref<8x128xf32, #tpu.memory_space<vmem>>, vector<8x128xf32>,
    } else {
    }
    %c16_i32_1 = arith.constant 16 : i32
    %6 = arith.addi %2, %c16_i32_1 : i32
    %c16_i32_2 = arith.constant 16 : i32
    %7 = arith.cmpi sle, %6, %c16_i32_2 : i32
    %8 = arith.extui %7 : i1 to i32
    %c0_i32_3 = arith.constant 0 : i32
    %9 = arith.cmpi ne, %8, %c0_i32_3 : i32
    scf.if %9 {
      %c0 = arith.constant 0 : index
      %c0_4 = arith.constant 0 : index
      %10 = vector.load %arg4[%c0, %c0_4] : memref<8x128xf32, #tpu.memory_space<vmem>>, vector<8x128xf32>
      %c0_5 = arith.constant 0 : index
      %c0_6 = arith.constant 0 : index
      %11 = vector.load %arg2[%c0_5, %c0_6] : memref<16x128xf32, #tpu.memory_space<vmem>>, vector<16x128xf32>
      %c0_7 = arith.constant 0 : index
      %c0_8 = arith.constant 0 : index
      %12 = vector.load %arg3[%c0_7, %c0_8] : memref<16x128xf32, #tpu.memory_space<vmem>>, vector<16x128xf32>
      %13 = arith.subf %11, %12 : vector<16x128xf32>
      %14 = arith.mulf %13, %13 : vector<16x128xf32>
      %15 = vector.shape_cast %14 : vector<16x128xf32> to vector<2x8x128xf32>
      %cst = arith.constant dense<0.000000e+00> : vector<8x128xf32>
      %16 = vector.multi_reduction <add>, %15, %cst [0] : vector<2x8x128xf32> to vector<8x128xf32>
      %17 = arith.addf %10, %16 : vector<8x128xf32>
      %c0_9 = arith.constant 0 : index
      %c0_10 = arith.constant 0 : index
      %18 = vector.load %arg4[%c0_9, %c0_10] : memref<8x128xf32, #tpu.memory_space<vmem>>, vector<8x128xf32>
      tpu.vector_store %arg4[%c0_9, %c0_10], %17 {strides = array<i32>} : memref<8x128xf32, #tpu.memory_space<vmem>>, vector<8x128xf32>,
    } else {
    }
    return
  }
  func.func @transform_0(%arg0: i32, %arg1: i32) -> (i32, i32) {
    %c1_i32 = arith.constant 1 : i32
    %0 = arith.muli %arg0, %c1_i32 : i32
    %1 = arith.addi %0, %arg1 : i32
    %c0_i32 = arith.constant 0 : i32
    %2 = arith.minsi %1, %c0_i32 : i32
    %c0_i32_0 = arith.constant 0 : i32
    %c0_i32_1 = arith.constant 0 : i32
    return %2, %c0_i32_0 : i32, i32
  }
  func.func @transform_1(%arg0: i32, %arg1: i32) -> (i32, i32) {
    %c1_i32 = arith.constant 1 : i32
    %0 = arith.muli %arg0, %c1_i32 : i32
    %1 = arith.addi %0, %arg1 : i32
    %c0_i32 = arith.constant 0 : i32
    %2 = arith.minsi %1, %c0_i32 : i32
    %c0_i32_0 = arith.constant 0 : i32
    %c0_i32_1 = arith.constant 0 : i32
    return %2, %c0_i32_0 : i32, i32
  }
  func.func @transform_2(%arg0: i32, %arg1: i32) -> (i32, i32) {
    %c0_i32 = arith.constant 0 : i32
    %c0_i32_0 = arith.constant 0 : i32
    return %arg0, %c0_i32 : i32, i32
  }
}

</mosaic_0001>

<bundles_post_ra>
// kernel: tpu_custom_call.1
= control target key start
LH: loop header
LB: loop body
LE: loop exit
PB: predicated region body
PF: predicated region fallthrough
CT: control target
= control target key end

     0   :  { %7 = vsyncpa [#allocation3], 0  ;;  %s238_s0 = inlined_call_operand.hbm [shape: f32[16,128], index: 0, kind: input, shape index: {}]   ;;  %s239_s1 = inlined_call_operand.hbm [shape: f32[16,128], index: 1, kind: input, shape index: {}]   ;;  %s240_s2 = inlined_call_operand.hbm [shape: f32[8,128], index: 2, kind: output, shape index: {}]  }
   0x1   :  { %8 = vsyncpa [#allocation6], 0 }
   0x2   :  { %9 = vsyncpa [#allocation4], 0  ;;  %s182_s9 = smov [#allocation2]   ;;  %s110_s13 = scalar_lea.hbm %s238_s0, 256 }
   0x3   :  { %s21_s10 = sshll.u32 %s182_s9, 4  ;;  %p111_p0 = scmp.ne.s32.totalorder %s238_s0, %s110_s13  ;;  %s22_s10 = int_to_ptr.vmem [resolvable:$true] %s21_s10 }
   0x4   :  { %p114_p1 = scmp.lt.u32.totalorder %s110_s13, %s238_s0 }
   0x6   :  { %p116_p2 = pnand %p114_p1, %p111_p0 }
   0x8   :  { %119 = shalt.err (!%p116_p2)
}
   0x9   :  { %s120_s18 = scalar_lea.vmem %s22_s10, 256  ;;  %p125_p4 = scmp.lt.s32.totalorder %s22_s10, %s22_s10 }
   0xa   :  { %p121_p3 = scmp.ne.s32.totalorder %s22_s10, %s120_s18  ;;  %p126_p5 = scmp.lt.s32.totalorder %s120_s18, %s120_s18 }
   0xc   :  { %p127_p6 = por %p126_p5, %p125_p4 }
   0xe   :  { %p128_p7 = pnand %p127_p6, %p121_p3 }
  0x10   :  { %131 = shalt.err (!%p128_p7)
}
  0x11   :  { %s183_s19 = smov 128   ;;  %s184_s20 = smov 8  }
  0x12   :  { %27 = dma.hbm_to_vmem [thread:$0]  %s238_s0, 256, %s22_s10, [#allocation3], %s183_s19, %s183_s19, %s184_s20  }
  0x13   :  { %s185_s23 = smov [#allocation5]   ;;  %s132_s27 = scalar_lea.hbm %s239_s1, 256 }
  0x14   :  { %s39_s24 = sshll.u32 %s185_s23, 4  ;;  %p133_p8 = scmp.ne.s32.totalorder %s239_s1, %s132_s27  ;;  %s40_s24 = int_to_ptr.vmem [resolvable:$true] %s39_s24 }
  0x15   :  { %p136_p9 = scmp.lt.u32.totalorder %s132_s27, %s239_s1 }
  0x17   :  { %p138_p10 = pnand %p136_p9, %p133_p8 }
  0x19   :  { %141 = shalt.err (!%p138_p10)
}
  0x1a   :  { %s142_s4 = scalar_lea.vmem %s40_s24, 256  ;;  %p147_p12 = scmp.lt.s32.totalorder %s40_s24, %s40_s24 }
  0x1b   :  { %p143_p11 = scmp.ne.s32.totalorder %s40_s24, %s142_s4  ;;  %p148_p13 = scmp.lt.s32.totalorder %s142_s4, %s142_s4 }
  0x1d   :  { %p149_p0 = por %p148_p13, %p147_p12 }
  0x1f   :  { %p150_p1 = pnand %p149_p0, %p143_p11 }
  0x21   :  { %153 = shalt.err (!%p150_p1)
}
  0x22   :  { %45 = dma.hbm_to_vmem [thread:$0]  %s239_s1, 256, %s40_s24, [#allocation6], %s183_s19, %s183_s19, %s184_s20  }
  0x23   :  { %176 = dma.done.wait [#allocation3], 256  }
  0x24   :  { %177 = vsyncadd [#allocation3], 4294967040 }
  0x25   :  { %178 = dma.done.wait [#allocation6], 256  }
  0x26   :  { %179 = vsyncadd [#allocation6], 4294967040  ;;  %v73_v0 = vld [vmem:[#allocation2] sm:$0xff]  ;;  %v74_v1 = vld [vmem:[#allocation2 + $0x8] sm:$0xff]  ;;  %s186_s6 = smov [#allocation7]  }
  0x27   :  { %v75_v2 = vld [vmem:[#allocation5] sm:$0xff]  ;;  %v76_v3 = vld [vmem:[#allocation5 + $0x8] sm:$0xff]  ;;  %s90_s7 = sshll.u32 %s186_s6, 4  ;;  %s91_s7 = int_to_ptr.vmem [resolvable:$true] %s90_s7 }
  0x28   :  { %v77_v4 = vsub.f32 %v73_v0, %v75_v2  ;;  %v78_v5 = vsub.f32 %v74_v1, %v76_v3  ;;  %s154_s8 = scalar_lea.vmem %s91_s7, 128  ;;  %p159_p3 = scmp.lt.s32.totalorder %s91_s7, %s91_s7 }
  0x29   :  { %p155_p2 = scmp.ne.s32.totalorder %s91_s7, %s154_s8  ;;  %p160_p4 = scmp.lt.s32.totalorder %s154_s8, %s154_s8 }
  0x2a   :  { %v79_v6 = vmul.f32 %v77_v4, %v77_v4  ;;  %v80_v7 = vmul.f32 %v78_v5, %v78_v5 }
  0x2b   :  { %p161_p5 = por %p160_p4, %p159_p3 }
  0x2c   :  { %v81_v8 = vadd.f32 %v80_v7, %v79_v6 }
  0x2d   :  { %p162_p6 = pnand %p161_p5, %p155_p2 }
  0x2e   :  { %83 = vst [vmem:[#allocation7] sm:$0xff] %v81_v8 }
  0x2f   :  { %165 = shalt.err (!%p162_p6)
}
  0x30   :  { %s166_s10 = scalar_lea.hbm %s240_s2, 128 }
  0x31   :  { %p167_p7 = scmp.ne.s32.totalorder %s240_s2, %s166_s10  ;;  %p170_p8 = scmp.lt.u32.totalorder %s166_s10, %s240_s2 }
  0x33   :  { %p172_p9 = pnand %p170_p8, %p167_p7 }
  0x35   :  { %175 = shalt.err (!%p172_p9)
}
  0x36   :  { %93 = dma.vmem_to_hbm [thread:$0]  %s91_s7, 128, %s240_s2, [#allocation4]  }
  0x37   :  { %180 = dma.done.wait [#allocation4], 128  }
  0x38   :  { %181 = vsyncadd [#allocation4], 4294967168 }
  0x39   :  { %97 = vsyncpa [#allocation3], 1 }
  0x3a   :  { %98 = vsyncpa [#allocation6], 1 }
  0x3b   :  { %99 = vsyncpa [#allocation4], 1 }

</bundles_post_ra>
